<compile_context>
chip_gen: v6e
topology: v6e:2x2x1
jax: 0.10.0
libtpu: 0.0.40
codegen_flags: <defaults>
</compile_context>

<pallas_src>
import functools

import jax
import jax.numpy as jnp
from jax.experimental import pallas as pl
from jax.experimental.pallas import tpu as pltpu

IN_FEATURES = 30
HIDDEN = 1024
LANE = 128


def _clustering_kernel(x_ref, w1_ref, b1_ref, w2_ref, b2_ref, out_ref):
    # x_ref:  (TM, 30)        f32 batch tile
    # w1_ref: (30, 1024)      bf16, full / VMEM-resident
    # b1_ref: (1, 1024)       f32
    # w2_ref: (1024, C_pad)   bf16, full / VMEM-resident
    # b2_ref: (1, C_pad)      f32
    # out_ref:(TM, C_pad)     f32
    x = x_ref[...].astype(jnp.bfloat16)

    # hidden = ReLU(x @ W1 + b1)  -- bf16 MXU matmul, f32 accumulate, VPU max
    h = jnp.dot(x, w1_ref[...], preferred_element_type=jnp.float32) + b1_ref[...]
    h = jnp.maximum(h, 0.0)

    # dropout(p=0.1) in eval mode == identity

    # out = h @ W2 + b2  -- bf16 MXU matmul into lane-dense (C_pad) output
    o = jnp.dot(h.astype(jnp.bfloat16), w2_ref[...],
                preferred_element_type=jnp.float32) + b2_ref[...]
    out_ref[...] = o.astype(out_ref.dtype)


@functools.partial(jax.jit, static_argnames=("block_m",))
def clustering_layer(features, w1, b1, w2, b2, *, block_m=512):
    """features: (N, 30) float32. Returns (N, num_clusters) float32."""
    n, d = features.shape
    assert d == IN_FEATURES
    num_clusters = w2.shape[1]

    # Effective batch tile: multiple of 8, no larger than (padded) N.
    bm = max(8, min(block_m, ((n + 7) // 8) * 8))
    n_pad = pl.cdiv(n, bm) * bm
    if n_pad != n:
        features = jnp.pad(features, ((0, n_pad - n), (0, 0)))

    # Lane-dense output: pad cluster dim to a multiple of 128 (zeros, sliced off).
    c_pad = max(LANE, pl.cdiv(num_clusters, LANE) * LANE)
    w2_p = jnp.zeros((HIDDEN, c_pad), jnp.float32).at[:, :num_clusters].set(w2)
    b2_p = jnp.zeros((1, c_pad), jnp.float32).at[0, :num_clusters].set(b2)

    # bf16 MXU operands (weights cast once in the wrapper); biases stay f32.
    w1_bf = w1.astype(jnp.bfloat16)
    w2_bf = w2_p.astype(jnp.bfloat16)
    b1_2d = b1.reshape(1, HIDDEN).astype(jnp.float32)

    out = pl.pallas_call(
        _clustering_kernel,
        out_shape=jax.ShapeDtypeStruct((n_pad, c_pad), jnp.float32),
        grid_spec=pltpu.PrefetchScalarGridSpec(
            num_scalar_prefetch=0,
            grid=(n_pad // bm,),
            in_specs=[
                # batch tile of the input
                pl.BlockSpec((bm, IN_FEATURES), lambda i: (i, 0)),
                # full (untiled) parameters, fetched once and VMEM-resident
                pl.BlockSpec((IN_FEATURES, HIDDEN), lambda i: (0, 0)),
                pl.BlockSpec((1, HIDDEN), lambda i: (0, 0)),
                pl.BlockSpec((HIDDEN, c_pad), lambda i: (0, 0)),
                pl.BlockSpec((1, c_pad), lambda i: (0, 0)),
            ],
            out_specs=pl.BlockSpec((bm, c_pad), lambda i: (i, 0)),
        ),
        compiler_params=pltpu.CompilerParams(
            dimension_semantics=("parallel",),
        ),
    )(features, w1_bf, b1_2d, w2_bf, b2_p)

    return out[:n, :num_clusters]


def init_params(key, num_clusters):
    """Deterministic PyTorch-style (Kaiming-uniform) init for the two Linears."""
    k1, k2, k3, k4 = jax.random.split(key, 4)
    bound1 = 1.0 / jnp.sqrt(jnp.float32(IN_FEATURES))
    bound2 = 1.0 / jnp.sqrt(jnp.float32(HIDDEN))
    # stored as (in, out) == torch weight transposed
    w1 = jax.random.uniform(k1, (IN_FEATURES, HIDDEN), jnp.float32, -bound1, bound1)
    b1 = jax.random.uniform(k2, (HIDDEN,), jnp.float32, -bound1, bound1)
    w2 = jax.random.uniform(k3, (HIDDEN, num_clusters), jnp.float32, -bound2, bound2)
    b2 = jax.random.uniform(k4, (num_clusters,), jnp.float32, -bound2, bound2)
    return w1, b1, w2, b2


if __name__ == "__main__":
    num_clusters = 10
    batch = 8  # small batch of cells/spots; feature dim fixed at 30 by the module

    key = jax.random.PRNGKey(0)
    kx, kp = jax.random.split(key)
    features = jax.random.normal(kx, (batch, IN_FEATURES), jnp.float32)
    w1, b1, w2, b2 = init_params(kp, num_clusters)

    out = clustering_layer(features, w1, b1, w2, b2)
    out = jax.block_until_ready(out)

    # Pure-JAX f32 reference (eval-mode dropout == identity). Tolerance is
    # loosened because the kernel feeds the MXU bf16 operands (f32 accumulate).
    ref = jnp.maximum(features @ w1 + b1, 0.0) @ w2 + b2
    assert out.shape == (batch, num_clusters)
    assert jnp.allclose(out, ref, atol=2e-2, rtol=2e-2)

    print("KERNEL_OK")
</pallas_src>

<mosaic_0001>
module attributes {stable_mosaic.version = 11 : i64} {
  func.func @_clustering_kernel(%arg0: i32, %arg1: memref<8x30xf32, #tpu.memory_space<vmem>>, %arg2: memref<30x1024xbf16, #tpu.memory_space<vmem>>, %arg3: memref<1x1024xf32, #tpu.memory_space<vmem>>, %arg4: memref<1024x128xbf16, #tpu.memory_space<vmem>>, %arg5: memref<1x128xf32, #tpu.memory_space<vmem>>, %arg6: memref<8x128xf32, #tpu.memory_space<vmem>>) attributes {dimension_semantics = [#tpu.dimension_semantics<parallel>], iteration_bounds = array<i64: 1>, scalar_prefetch = 0 : i64, scratch_operands = 0 : i64, tpu.core_type = #tpu.core_type<tc>, window_params = [{transform_indices = @transform_0, window_bounds = array<i64: 8, 30>}, {pipeline_mode = #tpu.pipeline_mode<synchronous>, transform_indices = @transform_1, window_bounds = array<i64: 30, 1024>}, {pipeline_mode = #tpu.pipeline_mode<synchronous>, transform_indices = @transform_2, window_bounds = array<i64: 1, 1024>}, {pipeline_mode = #tpu.pipeline_mode<synchronous>, transform_indices = @transform_3, window_bounds = array<i64: 1024, 128>}, {pipeline_mode = #tpu.pipeline_mode<synchronous>, transform_indices = @transform_4, window_bounds = array<i64: 1, 128>}, {transform_indices = @transform_5, window_bounds = array<i64: 8, 128>}]} {
    %c0 = arith.constant 0 : index
    %c0_0 = arith.constant 0 : index
    %0 = vector.load %arg1[%c0, %c0_0] : memref<8x30xf32, #tpu.memory_space<vmem>>, vector<8x30xf32>
    %1 = arith.truncf %0 : vector<8x30xf32> to vector<8x30xbf16>
    %c0_1 = arith.constant 0 : index
    %c0_2 = arith.constant 0 : index
    %2 = vector.load %arg2[%c0_1, %c0_2] : memref<30x1024xbf16, #tpu.memory_space<vmem>>, vector<30x1024xbf16>
    %cst = arith.constant dense<0.000000e+00> : vector<8x1024xf32>
    %3 = tpu.matmul %1, %2, %cst {dimension_numbers = #tpu.dot_dimension_numbers<[1], [0], [0], [1], [0, 0, 1, 1], [], []>} : vector<8x30xbf16>, vector<30x1024xbf16>, vector<8x1024xf32> -> vector<8x1024xf32>
    %c0_3 = arith.constant 0 : index
    %c0_4 = arith.constant 0 : index
    %4 = vector.load %arg3[%c0_3, %c0_4] : memref<1x1024xf32, #tpu.memory_space<vmem>>, vector<1x1024xf32>
    %5 = vector.broadcast %4 : vector<1x1024xf32> to vector<8x1024xf32>
    %6 = arith.addf %3, %5 : vector<8x1024xf32>
    %cst_5 = arith.constant 0.000000e+00 : f32
    %7 = vector.broadcast %cst_5 : f32 to vector<8x1024xf32>
    %8 = arith.maximumf %6, %7 : vector<8x1024xf32>
    %9 = arith.truncf %8 : vector<8x1024xf32> to vector<8x1024xbf16>
    %c0_6 = arith.constant 0 : index
    %c0_7 = arith.constant 0 : index
    %10 = vector.load %arg4[%c0_6, %c0_7] : memref<1024x128xbf16, #tpu.memory_space<vmem>>, vector<1024x128xbf16>
    %cst_8 = arith.constant dense<0.000000e+00> : vector<8x128xf32>
    %11 = tpu.matmul %9, %10, %cst_8 {dimension_numbers = #tpu.dot_dimension_numbers<[1], [0], [0], [1], [0, 0, 1, 1], [], []>} : vector<8x1024xbf16>, vector<1024x128xbf16>, vector<8x128xf32> -> vector<8x128xf32>
    %c0_9 = arith.constant 0 : index
    %c0_10 = arith.constant 0 : index
    %12 = vector.load %arg5[%c0_9, %c0_10] : memref<1x128xf32, #tpu.memory_space<vmem>>, vector<1x128xf32>
    %13 = vector.broadcast %12 : vector<1x128xf32> to vector<8x128xf32>
    %14 = arith.addf %11, %13 : vector<8x128xf32>
    %c0_11 = arith.constant 0 : index
    %c0_12 = arith.constant 0 : index
    %15 = vector.load %arg6[%c0_11, %c0_12] : memref<8x128xf32, #tpu.memory_space<vmem>>, vector<8x128xf32>
    tpu.vector_store %arg6[%c0_11, %c0_12], %14 {strides = array<i32>} : memref<8x128xf32, #tpu.memory_space<vmem>>, vector<8x128xf32>,
    return
  }
  func.func @transform_0(%arg0: i32) -> (i32, i32) {
    %c0_i32 = arith.constant 0 : i32
    %c0_i32_0 = arith.constant 0 : i32
    return %arg0, %c0_i32 : i32, i32
  }
  func.func @transform_1(%arg0: i32) -> (i32, i32) {
    %c0_i32 = arith.constant 0 : i32
    %c0_i32_0 = arith.constant 0 : i32
    %c0_i32_1 = arith.constant 0 : i32
    return %c0_i32, %c0_i32_0 : i32, i32
  }
  func.func @transform_2(%arg0: i32) -> (i32, i32) {
    %c0_i32 = arith.constant 0 : i32
    %c0_i32_0 = arith.constant 0 : i32
    %c0_i32_1 = arith.constant 0 : i32
    return %c0_i32, %c0_i32_0 : i32, i32
  }
  func.func @transform_3(%arg0: i32) -> (i32, i32) {
    %c0_i32 = arith.constant 0 : i32
    %c0_i32_0 = arith.constant 0 : i32
    %c0_i32_1 = arith.constant 0 : i32
    return %c0_i32, %c0_i32_0 : i32, i32
  }
  func.func @transform_4(%arg0: i32) -> (i32, i32) {
    %c0_i32 = arith.constant 0 : i32
    %c0_i32_0 = arith.constant 0 : i32
    %c0_i32_1 = arith.constant 0 : i32
    return %c0_i32, %c0_i32_0 : i32, i32
  }
  func.func @transform_5(%arg0: i32) -> (i32, i32) {
    %c0_i32 = arith.constant 0 : i32
    %c0_i32_0 = arith.constant 0 : i32
    return %arg0, %c0_i32 : i32, i32
  }
}

</mosaic_0001>

<bundles_post_ra>
// kernel: clustering_layer.1
= control target key start
LH: loop header
LB: loop body
LE: loop exit
PB: predicated region body
PF: predicated region fallthrough
CT: control target
= control target key end

     0   :  { %vm158_vm0 = vcmask 1046528   ;;  %v1322_v8 = vmov 0   ;;  %vm154_vm1 = vcmask 244736   ;;  %s1641_s0 = inlined_call_operand.vmem [shape: f32[8,30], index: 0, kind: input, shape index: {}]   ;;  %s1642_s1 = inlined_call_operand.vmem [shape: bf16[30,1024], index: 1, kind: input, shape index: {}]   ;;  %s1643_s2 = inlined_call_operand.vmem [shape: f32[1,1024], index: 2, kind: input, shape index: {}]   ;;  %s1644_s3 = inlined_call_operand.vmem [shape: bf16[1024,128], index: 3, kind: input, shape index: {}]   ;;  %s1645_s4 = inlined_call_operand.vmem [shape: f32[1,128], index: 4, kind: input, shape index: {}]   ;;  %s1646_s5 = inlined_call_operand.hbm [shape: f32[8,128], index: 5, kind: output, shape index: {}]  }
   0x1   :  { %v32_v0 = vld [vmem:[%s1642_s1 + $0x40] sm:$0xff]  ;;  %v33_v2 = vld [vmem:[%s1642_s1 + $0x48] sm:$0xff]  ;;  %215 = vmatprep.mubr.bf16.mxu0 %v1322_v8  ;;  %256 = vmatprep.mubr.bf16.mxu1 %v1322_v8  ;;  %v34_v16 = vld [vmem:[%s1642_s1 + $0x50] sm:$0xff] }
   0x2   :  { %v36_v1 = vld [vmem:[%s1642_s1 + $0x60] sm:$0x77]  ;;  %v37_v4 = vld [vmem:[%s1642_s1 + $0x68] sm:$0x77]  ;;  %v38_v17 = vld [vmem:[%s1642_s1 + $0x70] sm:$0x77] }
   0x3   :  { %v1066_v3 = vcombine.high %v32_v0, %v36_v1  ;;  %v1065_v5 = vcombine.low %v32_v0, %v36_v1  ;;  %v24_v6 = vld [vmem:[%s1642_s1] sm:$0xff]  ;;  %v1068_v9 = vcombine.high %v33_v2, %v37_v4  ;;  %v1067_v10 = vcombine.low %v33_v2, %v37_v4  ;;  %v25_v12 = vld [vmem:[%s1642_s1 + $0x8] sm:$0xff]  ;;  %v35_v18 = vld [vmem:[%s1642_s1 + $0x58] sm:$0xff] }
   0x4   :  { %v28_v7 = vld [vmem:[%s1642_s1 + $0x20] sm:$0xff]  ;;  %v29_v13 = vld [vmem:[%s1642_s1 + $0x28] sm:$0xff]  ;;  %v39_v22 = vld [vmem:[%s1642_s1 + $0x78] sm:$0x77]  ;;  %v1070_v24 = vcombine.high %v34_v16, %v38_v17  ;;  %v1069_v25 = vcombine.low %v34_v16, %v38_v17 }
   0x5   :  { %v1058_v11 = vcombine.high %v24_v6, %v28_v7  ;;  %1073 = vmatprep.subr.msk.bf16.mxu0 %vm158_vm0, %v1066_v3  ;;  %v160_v14 = vsel %vm158_vm0, %v1065_v5, 0  ;;  %v1060_v15 = vcombine.high %v25_v12, %v29_v13  ;;  %1075 = vmatprep.subr.msk.bf16.mxu1 %vm158_vm0, %v1068_v9  ;;  %v166_v19 = vsel %vm158_vm0, %v1067_v10, 0  ;;  %v22_v21 = vld [vmem:[%s1641_s0] sm:$0xff]  ;;  %v26_v26 = vld [vmem:[%s1642_s1 + $0x10] sm:$0xff]  ;;  %v27_v30 = vld [vmem:[%s1642_s1 + $0x18] sm:$0xff] }
   0x6   :  { %196 = vmatpush1.bf16.msra.mxu0 %v160_v14  ;;  %v1057_v20 = vcombine.low %v24_v6, %v28_v7  ;;  %237 = vmatpush1.bf16.msra.mxu1 %v166_v19  ;;  %v1059_v23 = vcombine.low %v25_v12, %v29_v13  ;;  %v30_v27 = vld [vmem:[%s1642_s1 + $0x30] sm:$0xff]  ;;  %v1072_v28 = vcombine.high %v35_v18, %v39_v22  ;;  %v31_v32 = vld [vmem:[%s1642_s1 + $0x38] sm:$0xff]  ;;  %v172_v33 = vsel %vm158_vm0, %v1069_v25, 0  ;;  %v1244_v47 = vld [vmem:[%s1644_s3 + $0x68] sm:$0xff]  }
   0x7   :  { %197 = vmatprep.subr.bf16.mxu0 %v1058_v11  ;;  %238 = vmatprep.subr.bf16.mxu1 %v1060_v15  ;;  %v1071_v29 = vcombine.low %v35_v18, %v39_v22  ;;  %v23_v31 = vpack.c.bf16 %v22_v21, %v22_v21  ;;  %v1062_v34 = vcombine.high %v26_v26, %v30_v27  ;;  %v1236_v39 = vld [vmem:[%s1644_s3 + $0x78] sm:$0xff]   ;;  %v1240_v43 = vld [vmem:[%s1644_s3 + $0x70] sm:$0xff]   ;;  %v1245_v48 = vld [vmem:[%s1644_s3 + $0xe8] sm:$0xff]  }
   0x8   :  { %v1064_v36 = vcombine.high %v27_v30, %v31_v32  ;;  %v1061_v37 = vcombine.low %v26_v26, %v30_v27  ;;  %v1063_v38 = vcombine.low %v27_v30, %v31_v32  ;;  %v1237_v40 = vld [vmem:[%s1644_s3 + $0xf8] sm:$0xff]   ;;  %v1241_v44 = vld [vmem:[%s1644_s3 + $0xf0] sm:$0xff]   ;;  %v1246_v49 = vld [vmem:[%s1644_s3 + $0x28] sm:$0xff]  }
   0x9   :  { %v178_v35 = vsel %vm158_vm0, %v1071_v29, 0  ;;  %v1238_v41 = vld [vmem:[%s1644_s3 + $0x38] sm:$0xff]   ;;  %v1242_v45 = vld [vmem:[%s1644_s3 + $0x30] sm:$0xff]   ;;  %v1247_v50 = vld [vmem:[%s1644_s3 + $0xa8] sm:$0xff]  }
   0xa   :  { %198 = vmatpush1.bf16.msra.mxu0 %v1057_v20  ;;  %239 = vmatpush1.bf16.msra.mxu1 %v1059_v23  ;;  %v1239_v42 = vld [vmem:[%s1644_s3 + $0xb8] sm:$0xff]   ;;  %v1243_v46 = vld [vmem:[%s1644_s3 + $0xb0] sm:$0xff]   ;;  %v1248_v51 = vld [vmem:[%s1644_s3 + $0x60] sm:$0xff]  }
   0xb   :  { %1077 = vmatprep.subr.msk.bf16.mxu0 %vm158_vm0, %v1070_v24  ;;  %1079 = vmatprep.subr.msk.bf16.mxu1 %vm158_vm0, %v1072_v28  ;;  %v1249_v52 = vld [vmem:[%s1644_s3 + $0xe0] sm:$0xff]   ;;  %v1252_v55 = vld [vmem:[%s1644_s3 + $0x58] sm:$0xff]   ;;  %v1256_v59 = vld [vmem:[%s1644_s3 + $0x50] sm:$0xff]  }
   0xc   :  { %v1250_v53 = vld [vmem:[%s1644_s3 + $0x20] sm:$0xff]   ;;  %v1253_v56 = vld [vmem:[%s1644_s3 + $0xd8] sm:$0xff]   ;;  %v1257_v60 = vld [vmem:[%s1644_s3 + $0xd0] sm:$0xff]  }
   0xd   :  { %1074 = vmatmul.mubr.msk.bf16.vlgmr.msra.gmra.mxu0 %vm154_vm1, %v23_v31  ;;  %1076 = vmatmul.mubr.msk.bf16.vlgmr.msra.gmra.mxu1 %vm154_vm1, %v23_v31  ;;  %v1251_v54 = vld [vmem:[%s1644_s3 + $0xa0] sm:$0xff]   ;;  %v1254_v57 = vld [vmem:[%s1644_s3 + $0x18] sm:$0xff]   ;;  %v1258_v61 = vld [vmem:[%s1644_s3 + $0x10] sm:$0xff]  }
   0xe   :  { %278 = vmatpush1.bf16.msra.mxu0 %v172_v33  ;;  %319 = vmatpush1.bf16.msra.mxu1 %v178_v35  ;;  %v1255_v58 = vld [vmem:[%s1644_s3 + $0x98] sm:$0xff]   ;;  %v1259_v62 = vld [vmem:[%s1644_s3 + $0x90] sm:$0xff]  }
   0xf   :  { %279 = vmatprep.subr.bf16.mxu0 %v1062_v34  ;;  %320 = vmatprep.subr.bf16.mxu1 %v1064_v36 }
  0x10   :  { %297 = vmatprep.mubr.bf16.mxu0 %v1322_v8  ;;  %338 = vmatprep.mubr.bf16.mxu1 %v1322_v8 }
  0x12   :  { %280 = vmatpush1.bf16.msra.mxu0 %v1061_v37  ;;  %321 = vmatpush1.bf16.msra.mxu1 %v1063_v38 }
  0x13   :  { %1146 = vmatprep.subr.bf16.mxu0 %v1236_v39  ;;  %1168 = vmatprep.subr.bf16.mxu1 %v1237_v40 }
  0x15   :  { %1078 = vmatmul.mubr.msk.bf16.vlgmr.msra.gmra.mxu0 %vm154_vm1, %v23_v31  ;;  %1080 = vmatmul.mubr.msk.bf16.vlgmr.msra.gmra.mxu1 %vm154_vm1, %v23_v31 }
  0x16   :  { %1147 = vmatpush3.bf16.msra.mxu0 %v1238_v41  ;;  %1169 = vmatpush3.bf16.msra.mxu1 %v1239_v42 }
  0x17   :  { %1148 = vmatprep.subr.bf16.mxu0 %v1240_v43  ;;  %1170 = vmatprep.subr.bf16.mxu1 %v1241_v44 }
  0x1a   :  { %1149 = vmatpush3.bf16.msra.mxu0 %v1242_v45  ;;  %1171 = vmatpush3.bf16.msra.mxu1 %v1243_v46 }
  0x1b   :  { %1150 = vmatprep.subr.bf16.mxu0 %v1244_v47  ;;  %1172 = vmatprep.subr.bf16.mxu1 %v1245_v48 }
  0x1e   :  { %1151 = vmatpush3.bf16.msra.mxu0 %v1246_v49  ;;  %1173 = vmatpush3.bf16.msra.mxu1 %v1247_v50 }
  0x1f   :  { %1152 = vmatprep.subr.bf16.mxu0 %v1248_v51  ;;  %1174 = vmatprep.subr.bf16.mxu1 %v1249_v52 }
  0x22   :  { %1153 = vmatpush3.bf16.msra.mxu0 %v1250_v53  ;;  %1175 = vmatpush3.bf16.msra.mxu1 %v1251_v54 }
  0x23   :  { %1154 = vmatprep.subr.bf16.mxu0 %v1252_v55  ;;  %1176 = vmatprep.subr.bf16.mxu1 %v1253_v56 }
  0x26   :  { %1155 = vmatpush3.bf16.msra.mxu0 %v1254_v57  ;;  %1177 = vmatpush3.bf16.msra.mxu1 %v1255_v58 }
  0x27   :  { %1156 = vmatprep.subr.bf16.mxu0 %v1256_v59  ;;  %1178 = vmatprep.subr.bf16.mxu1 %v1257_v60 }
  0x2a   :  { %1157 = vmatpush3.bf16.msra.mxu0 %v1258_v61  ;;  %1179 = vmatpush3.bf16.msra.mxu1 %v1259_v62 }
  0x2b   :  { %10 = vsyncpa [#allocation3], 0  ;;  %v1260_v63 = vld [vmem:[%s1644_s3 + $0x48] sm:$0xff]   ;;  %v1264_v3 = vld [vmem:[%s1644_s3 + $0x40] sm:$0xff]   ;;  %v42_v9 = vlaneseq }
  0x2c   :  { %v1261_v0 = vld [vmem:[%s1644_s3 + $0xc8] sm:$0xff]   ;;  %1158 = vmatprep.subr.bf16.mxu0 %v1260_v63  ;;  %v1265_v4 = vld [vmem:[%s1644_s3 + $0xc0] sm:$0xff]   ;;  %v1268_v7 = vld [vmem:[%s1644_s3 + $0x178] sm:$0xff]  }
  0x2d   :  { %v1262_v1 = vld [vmem:[%s1644_s3 + $0x8] sm:$0xff]   ;;  %1180 = vmatprep.subr.bf16.mxu1 %v1261_v0  ;;  %v1266_v5 = vld [vmem:[%s1644_s3] sm:$0xff]   ;;  %v1269_v8 = vld [vmem:[%s1644_s3 + $0x1f8] sm:$0xff]   ;;  %v1519_v10 = vshrl.u32 %v42_v9, 7 }
  0x2e   :  { %v1263_v2 = vld [vmem:[%s1644_s3 + $0x88] sm:$0xff]   ;;  %1159 = vmatpush3.bf16.msra.mxu0 %v1262_v1  ;;  %v1267_v6 = vld [vmem:[%s1644_s3 + $0x80] sm:$0xff]   ;;  %v1270_v40 = vld [vmem:[%s1644_s3 + $0x138] sm:$0xff]  }
  0x2f   :  { %1181 = vmatpush3.bf16.msra.mxu1 %v1263_v2  ;;  %1160 = vmatprep.subr.bf16.mxu0 %v1264_v3  ;;  %v44_v11 = vsub.s32 0, %v1519_v10  ;;  %v1525_v12 = vld [vmem:[%s1643_s2] sm:$0xff]  ;;  %v52_v13 = vsub.s32 2, %v1519_v10  ;;  %v48_v14 = vsub.s32 1, %v1519_v10  ;;  %v56_v15 = vsub.s32 3, %v1519_v10  ;;  %v1271_v44 = vld [vmem:[%s1644_s3 + $0x1b8] sm:$0xff]  }
  0x30   :  { %1182 = vmatprep.subr.bf16.mxu1 %v1265_v4  ;;  %v64_v27 = vsub.s32 5, %v1519_v10  ;;  %v72_v32 = vsub.s32 7, %v1519_v10  ;;  %v1272_v45 = vld [vmem:[%s1644_s3 + $0x170] sm:$0xff]   ;;  %v1276_v55 = vld [vmem:[%s1644_s3 + $0x168] sm:$0xff]   ;;  %v1280_v3 = vld [vmem:[%s1644_s3 + $0x160] sm:$0xff]  }
  0x31   :  { %v45_v16 = vrot.slane %v1525_v12, %v44_v11  ;;  %v53_v17 = vrot.slane %v1525_v12, %v52_v13  ;;  %v49_v18 = vrot.slane %v1525_v12, %v48_v14  ;;  %v57_v20 = vrot.slane %v1525_v12, %v56_v15  ;;  %v1273_v48 = vld [vmem:[%s1644_s3 + $0x1f0] sm:$0xff]   ;;  %v1277_v58 = vld [vmem:[%s1644_s3 + $0x1e8] sm:$0xff]   ;;  %v1285_v9 = vld [vmem:[%s1644_s3 + $0x1d8] sm:$0xff]  }
  0x32   :  { %1161 = vmatpush3.bf16.msra.mxu0 %v1266_v5  ;;  %v65_v41 = vrot.slane %v1525_v12, %v64_v27  ;;  %v73_v47 = vrot.slane %v1525_v12, %v72_v32  ;;  %v1274_v51 = vld [vmem:[%s1644_s3 + $0x130] sm:$0xff]   ;;  %v1278_v63 = vld [vmem:[%s1644_s3 + $0x128] sm:$0xff]   ;;  %v1281_v5 = vld [vmem:[%s1644_s3 + $0x1e0] sm:$0xff]   ;;  %v68_v13 = vsub.s32 6, %v1519_v10  ;;  %v60_v14 = vsub.s32 4, %v1519_v10 }
  0x33   :  { %1183 = vmatpush3.bf16.msra.mxu1 %v1267_v6  ;;  %1190 = vmatprep.subr.bf16.mxu0 %v1268_v7  ;;  %v1275_v54 = vld [vmem:[%s1644_s3 + $0x1b0] sm:$0xff]   ;;  %v1279_v2 = vld [vmem:[%s1644_s3 + $0x1a8] sm:$0xff]   ;;  %v1282_v6 = vld [vmem:[%s1644_s3 + $0x120] sm:$0xff]  }
  0x34   :  { %1212 = vmatprep.subr.bf16.mxu1 %v1269_v8  ;;  %v1283_v7 = vld [vmem:[%s1644_s3 + $0x1a0] sm:$0xff]   ;;  %v1284_v8 = vld [vmem:[%s1644_s3 + $0x158] sm:$0xff]   ;;  %v1290_v10 = vld [vmem:[%s1644_s3 + $0x110] sm:$0xff]  }
  0x35   :  { %v1286_v11 = vld [vmem:[%s1644_s3 + $0x118] sm:$0xff]   ;;  %v1297_v27 = vld [vmem:[%s1644_s3 + $0x1c0] sm:$0xff]  }
  0x36   :  { %v1287_v15 = vld [vmem:[%s1644_s3 + $0x198] sm:$0xff]  }
  0xcd   :  { %v217_v19 = vpop.f32.mrf.mxu0  ;;  %v258_v22 = vpop.f32.mrf.mxu1 }
  0xce   :  { %v218_v21 = vadd.f32 %v217_v19, %v45_v16  ;;  %v259_v23 = vadd.f32 %v258_v22, %v53_v17  ;;  %v1288_v16 = vld [vmem:[%s1644_s3 + $0x150] sm:$0xff]   ;;  %v61_v19 = vrot.slane %v1525_v12, %v60_v14  ;;  %v1293_v22 = vld [vmem:[%s1644_s3 + $0x1c8] sm:$0xff]  }
  0xcf   :  { %v219_v24 = vpop.f32.mrf.mxu0  ;;  %v260_v26 = vpop.f32.mrf.mxu1  ;;  %v1289_v17 = vld [vmem:[%s1644_s3 + $0x1d0] sm:$0xff]  }
  0xd0   :  { %v220_v25 = vadd.f32 %v219_v24, %v49_v18  ;;  %v347_v28 = vmax.f32 %v218_v21, 0.0  ;;  %v349_v29 = vmax.f32 %v259_v23, 0.0  ;;  %v261_v30 = vadd.f32 %v260_v26, %v57_v20  ;;  %v1291_v20 = vld [vmem:[%s1644_s3 + $0x190] sm:$0xff]   ;;  %v1292_v21 = vld [vmem:[%s1644_s3 + $0x148] sm:$0xff]   ;;  %v1296_v26 = vld [vmem:[%s1644_s3 + $0x140] sm:$0xff]  }
  0xd1   :  { %v221_v31 = vpop.f32.mrf.mxu0  ;;  %v262_v34 = vpop.f32.mrf.mxu1  ;;  %v69_v18 = vrot.slane %v1525_v12, %v68_v13  ;;  %v1294_v12 = vld [vmem:[%s1644_s3 + $0x108] sm:$0xff]  }
  0xd2   :  { %v348_v33 = vmax.f32 %v220_v25, 0.0  ;;  %v350_v35 = vmax.f32 %v261_v30, 0.0  ;;  %v357_v37 = vpack.c.bf16 %v349_v29, %v349_v29  ;;  %v355_v42 = vpack.c.bf16 %v347_v28, %v347_v28  ;;  %v1295_v25 = vld [vmem:[%s1644_s3 + $0x188] sm:$0xff]   ;;  %v1298_v29 = vld [vmem:[%s1644_s3 + $0x100] sm:$0xff]  }
  0xd3   :  { %v222_v36 = vpop.f32.mrf.mxu0  ;;  %v263_v39 = vpop.f32.mrf.mxu1  ;;  %v1299_v31 = vld [vmem:[%s1644_s3 + $0x180] sm:$0xff]   ;;  %s1323_s3 = smov [#allocation2]  }
  0xd4   :  { %v356_v38 = vpack.c.bf16 %v348_v33, %v348_v33  ;;  %v358_v43 = vpack.c.bf16 %v350_v35, %v350_v35  ;;  %s1049_s21 = sshll.u32 %s1323_s3, 4  ;;  %s1050_s21 = int_to_ptr.vmem [resolvable:$true] %s1049_s21 }
  0xd5   :  { %v1546_v46 = vpop.f32.mrf.mxu0  ;;  %v340_v49 = vpop.f32.mrf.mxu1  ;;  %p1305_p1 = scmp.lt.s32.totalorder %s1050_s21, %s1050_s21 }
  0xd6   :  { %914 = vmatprep.mubr.bf16.mxu0 %v356_v38  ;;  %954 = vmatprep.mubr.bf16.mxu1 %v358_v43  ;;  %v341_v23 = vadd.f32 %v340_v49, %v69_v18  ;;  %v300_v24 = vadd.f32 %v1546_v46, %v61_v19  ;;  %v1081_v43 = vld [vmem:[%s1645_s4] ss:$0 sm:$0xff]  ;;  %s1300_s4 = scalar_lea.vmem %s1050_s21, 128 }
  0xd7   :  { %915 = vmatmul.mubr.bf16.vlgmr.msra.gmra.mxu0 %v355_v42  ;;  %v301_v50 = vpop.f32.mrf.mxu0  ;;  %955 = vmatmul.mubr.bf16.vlgmr.msra.gmra.mxu1 %v357_v37  ;;  %v342_v53 = vpop.f32.mrf.mxu1  ;;  %p1301_p0 = scmp.ne.s32.totalorder %s1050_s21, %s1300_s4  ;;  %p1306_p2 = scmp.lt.s32.totalorder %s1300_s4, %s1300_s4 }
  0xd8   :  { %1191 = vmatpush3.bf16.msra.mxu0 %v1270_v40  ;;  %v302_v52 = vadd.f32 %v301_v50, %v65_v41  ;;  %1213 = vmatpush3.bf16.msra.mxu1 %v1271_v44  ;;  %v343_v57 = vadd.f32 %v342_v53, %v73_v47  ;;  %v353_v28 = vmax.f32 %v341_v23, 0.0  ;;  %v351_v30 = vmax.f32 %v300_v24, 0.0 }
  0xd9   :  { %1192 = vmatprep.subr.bf16.mxu0 %v1272_v45  ;;  %v303_v56 = vpop.f32.mrf.mxu0  ;;  %1214 = vmatprep.subr.bf16.mxu1 %v1273_v48  ;;  %v344_v60 = vpop.f32.mrf.mxu1  ;;  %p1307_p3 = por %p1306_p2, %p1305_p1 }
  0xda   :  { %v352_v59 = vmax.f32 %v302_v52, 0.0  ;;  %v354_v61 = vmax.f32 %v343_v57, 0.0  ;;  %v361_v32 = vpack.c.bf16 %v353_v28, %v353_v28  ;;  %v359_v33 = vpack.c.bf16 %v351_v30, %v351_v30 }
  0xdb   :  { %v304_v62 = vpop.f32.mrf.mxu0  ;;  %v345_v1 = vpop.f32.mrf.mxu1  ;;  %p1308_p4 = pnand %p1307_p3, %p1301_p0 }
  0xdc   :  { %1193 = vmatpush3.bf16.msra.mxu0 %v1274_v51  ;;  %v360_v0 = vpack.c.bf16 %v352_v59, %v352_v59  ;;  %1215 = vmatpush3.bf16.msra.mxu1 %v1275_v54  ;;  %v362_v4 = vpack.c.bf16 %v354_v61, %v354_v61 }
  0xdd   :  { %1194 = vmatprep.subr.bf16.mxu0 %v1276_v55  ;;  %1216 = vmatprep.subr.bf16.mxu1 %v1277_v58 }
  0xde   :  { %994 = vmatprep.mubr.bf16.mxu0 %v360_v0  ;;  %1034 = vmatprep.mubr.bf16.mxu1 %v362_v4 }
  0xe0   :  { %1195 = vmatpush3.bf16.msra.mxu0 %v1278_v63  ;;  %1217 = vmatpush3.bf16.msra.mxu1 %v1279_v2 }
  0xe1   :  { %1196 = vmatprep.subr.bf16.mxu0 %v1280_v3  ;;  %1218 = vmatprep.subr.bf16.mxu1 %v1281_v5 }
  0xe4   :  { %1197 = vmatpush3.bf16.msra.mxu0 %v1282_v6  ;;  %1219 = vmatpush3.bf16.msra.mxu1 %v1283_v7 }
  0xe5   :  { %1198 = vmatprep.subr.bf16.mxu0 %v1284_v8  ;;  %1220 = vmatprep.subr.bf16.mxu1 %v1285_v9 }
  0xe8   :  { %1199 = vmatpush3.bf16.msra.mxu0 %v1286_v11  ;;  %1221 = vmatpush3.bf16.msra.mxu1 %v1287_v15 }
  0xe9   :  { %1200 = vmatprep.subr.bf16.mxu0 %v1288_v16  ;;  %1222 = vmatprep.subr.bf16.mxu1 %v1289_v17 }
  0xec   :  { %1201 = vmatpush3.bf16.msra.mxu0 %v1290_v10  ;;  %1223 = vmatpush3.bf16.msra.mxu1 %v1291_v20 }
  0xed   :  { %1202 = vmatprep.subr.bf16.mxu0 %v1292_v21  ;;  %1224 = vmatprep.subr.bf16.mxu1 %v1293_v22 }
  0xf0   :  { %1203 = vmatpush3.bf16.msra.mxu0 %v1294_v12  ;;  %1225 = vmatpush3.bf16.msra.mxu1 %v1295_v25 }
  0xf1   :  { %1204 = vmatprep.subr.bf16.mxu0 %v1296_v26  ;;  %1226 = vmatprep.subr.bf16.mxu1 %v1297_v27 }
  0xf4   :  { %1205 = vmatpush3.bf16.msra.mxu0 %v1298_v29  ;;  %1227 = vmatpush3.bf16.msra.mxu1 %v1299_v31 }
  0xf7   :  { %995 = vmatmul.mubr.bf16.vlgmr.msra.gmra.mxu0 %v359_v33  ;;  %1035 = vmatmul.mubr.bf16.vlgmr.msra.gmra.mxu1 %v361_v32 }
 0x197   :  { %v1162_v34 = vpop.f32.mrf.mxu0  ;;  %v1184_v35 = vpop.f32.mrf.mxu1 }
 0x199   :  { %v1163_v36 = vpop.f32.mrf.mxu0  ;;  %v1185_v37 = vpop.f32.mrf.mxu1 }
 0x19a   :  { %v1164_v42 = vadd.f32 %v1163_v36, %v1162_v34  ;;  %v1186_v46 = vadd.f32 %v1185_v37, %v1184_v35 }
 0x19b   :  { %v1165_v38 = vpop.f32.mrf.mxu0  ;;  %v1187_v39 = vpop.f32.mrf.mxu1 }
 0x19c   :  { %v917_v44 = vadd.f32 %v1164_v42, %v1081_v43 }
 0x19d   :  { %v1166_v40 = vpop.f32.mrf.mxu0  ;;  %v1188_v41 = vpop.f32.mrf.mxu1 }
 0x19e   :  { %v957_v49 = vadd.f32 %v1186_v46, %v917_v44 }
 0x1b7   :  { %v1206_v45 = vpop.f32.mrf.mxu0  ;;  %v1228_v47 = vpop.f32.mrf.mxu1 }
 0x1b9   :  { %v1207_v48 = vpop.f32.mrf.mxu0  ;;  %v1229_v51 = vpop.f32.mrf.mxu1 }
 0x1ba   :  { %v1208_v50 = vadd.f32 %v1207_v48, %v1206_v45  ;;  %v1230_v54 = vadd.f32 %v1229_v51, %v1228_v47 }
 0x1bb   :  { %v1209_v52 = vpop.f32.mrf.mxu0  ;;  %v1231_v55 = vpop.f32.mrf.mxu1 }
 0x1bc   :  { %v997_v53 = vadd.f32 %v1208_v50, %v957_v49 }
 0x1bd   :  { %v1210_v56 = vpop.f32.mrf.mxu0  ;;  %v1232_v57 = vpop.f32.mrf.mxu1 }
 0x1be   :  { %v1037_v58 = vadd.f32 %v1230_v54, %v997_v53 }
 0x1c0   :  { %1042 = vst [vmem:[#allocation2] sm:$0xff] %v1037_v58 }
 0x1c1   :  { %1311 = shalt.err (!%p1308_p4)
}
 0x1c2   :  { %1052 = dma.vmem_to_hbm [thread:$0]  %s1050_s21, 128, %s1646_s5, [#allocation3]  }
 0x1c3   :  { %1320 = dma.done.wait [#allocation3], 128  }
 0x1c4   :  { %1321 = vsyncadd [#allocation3], 4294967168 }
 0x1c5   :  { %1056 = vsyncpa [#allocation3], 1 }

</bundles_post_ra>
